<compile_context>
chip_gen: v7x
topology: tpu7x:2x2x1
jax: 0.10.0
libtpu: 0.0.40
codegen_flags: <defaults>
</compile_context>

<pallas_src>
import functools

import jax
import jax.numpy as jnp
from jax.experimental import pallas as pl
from jax.experimental.pallas import tpu as pltpu

_SUBLANE = 8  # f32 sublane count; batch blocks are kept a multiple of this


def _round_up(n, m):
    return ((n + m - 1) // m) * m


def _mlp_kernel(x_ref, w1_ref, b1_ref, w2_ref, b2_ref, o_ref):
    # fc1: [Bblk, In] @ [In, H]   (f32 accumulation on the MXU)
    h = jnp.dot(x_ref[...], w1_ref[...], preferred_element_type=jnp.float32)
    # bias add + ReLU in f32 on the VPU
    h = jnp.maximum(h + b1_ref[...].astype(jnp.float32), 0.0)
    # fc2: [Bblk, H] @ [H, Out]  -- h stays f32 (no downcast before the MXU)
    out = jnp.dot(h, w2_ref[...].astype(jnp.float32),
                  preferred_element_type=jnp.float32)
    o_ref[...] = (out + b2_ref[...].astype(jnp.float32)).astype(o_ref.dtype)


@functools.partial(jax.jit, static_argnames=("block_b",))
def simple_ann_forward(x, w1, b1, w2, b2, *, block_b=1024):
    """Forward pass of SimpleANN: relu(x @ w1 + b1) @ w2 + b2.

    x:  [B, In]   activations
    w1: [In, H]   fc1 weight (pre-transposed to in x out)
    b1: [1, H]    fc1 bias
    w2: [H, Out]  fc2 weight (pre-transposed)
    b2: [1, Out]  fc2 bias
    """
    batch, in_size = x.shape
    hidden = w1.shape[1]
    out_size = w2.shape[1]
    dtype = x.dtype

    # Batch tiling: no padding when the whole batch fits in one block
    # (block second-to-last dim == full array dim is always legal); otherwise
    # use an 8-aligned block and pad the batch axis only (<= b_blk-1 rows).
    if batch <= block_b:
        b_blk = batch
        b_pad = batch
    else:
        b_blk = _round_up(block_b, _SUBLANE)
        b_pad = _round_up(batch, b_blk)

    if b_pad == batch:
        x_in = x
    else:
        x_in = jnp.zeros((b_pad, in_size), dtype).at[:batch].set(x)

    grid = (b_pad // b_blk,)

    # Logical traffic / flops (not padded shapes) so XLA schedules sanely.
    itemsize = jnp.dtype(dtype).itemsize
    flops = 2 * batch * (in_size * hidden + hidden * out_size)
    bytes_accessed = itemsize * (
        batch * in_size + in_size * hidden + hidden
        + hidden * out_size + out_size + batch * out_size)

    vmem = pltpu.MemorySpace.VMEM
    out = pl.pallas_call(
        _mlp_kernel,
        out_shape=jax.ShapeDtypeStruct((b_pad, out_size), dtype),
        grid=grid,
        in_specs=[
            # x tile: streamed / double-buffered along the batch grid.
            pl.BlockSpec((b_blk, in_size), lambda i: (i, 0),
                         memory_space=vmem),
            # Weights / biases: same block every step -> VMEM-resident.
            # (tiny; if hidden grows, pin with pipeline_mode=pl.Buffered(1))
            pl.BlockSpec((in_size, hidden), lambda i: (0, 0),
                         memory_space=vmem),
            pl.BlockSpec((1, hidden), lambda i: (0, 0), memory_space=vmem),
            pl.BlockSpec((hidden, out_size), lambda i: (0, 0),
                         memory_space=vmem),
            pl.BlockSpec((1, out_size), lambda i: (0, 0), memory_space=vmem),
        ],
        out_specs=pl.BlockSpec((b_blk, out_size), lambda i: (i, 0),
                               memory_space=vmem),
        compiler_params=pltpu.CompilerParams(
            dimension_semantics=("parallel",)),
        cost_estimate=pl.CostEstimate(
            flops=flops, transcendentals=0, bytes_accessed=bytes_accessed),
    )(x_in, w1, b1, w2, b2)

    return out if b_pad == batch else out[:batch]


def init_simple_ann_params(key, input_size, hidden_size, output_size,
                           dtype=jnp.float32):
    """Deterministic init mimicking nn.Linear's U(-1/sqrt(fan_in), 1/sqrt(fan_in)).

    Weights are stored pre-transposed as [in_features, out_features].
    """
    k1, k2, k3, k4 = jax.random.split(key, 4)
    lim1 = 1.0 / jnp.sqrt(jnp.array(input_size, dtype=jnp.float32))
    lim2 = 1.0 / jnp.sqrt(jnp.array(hidden_size, dtype=jnp.float32))
    w1 = jax.random.uniform(k1, (input_size, hidden_size), dtype,
                            minval=-lim1, maxval=lim1)
    b1 = jax.random.uniform(k2, (1, hidden_size), dtype,
                            minval=-lim1, maxval=lim1)
    w2 = jax.random.uniform(k3, (hidden_size, output_size), dtype,
                            minval=-lim2, maxval=lim2)
    b2 = jax.random.uniform(k4, (1, output_size), dtype,
                            minval=-lim2, maxval=lim2)
    return w1, b1, w2, b2


if __name__ == "__main__":
    # Small shapes consistent with the module: batch=2, input=16, hidden=32, output=8
    batch, input_size, hidden_size, output_size = 2, 16, 32, 8

    key = jax.random.PRNGKey(0)
    k_x, k_params = jax.random.split(key)
    x = jax.random.normal(k_x, (batch, input_size), jnp.float32)
    w1, b1, w2, b2 = init_simple_ann_params(
        k_params, input_size, hidden_size, output_size)

    out = simple_ann_forward(x, w1, b1, w2, b2)
    jax.block_until_ready(out)

    # Pure-JAX reference check of the forward semantics.
    ref = jnp.maximum(x @ w1 + b1, 0.0) @ w2 + b2
    assert out.shape == (batch, output_size)
    assert jnp.allclose(out, ref, atol=1e-5, rtol=1e-5), (
        f"max abs err {jnp.max(jnp.abs(out - ref))}")

    # Also exercise the multi-step / batch-padded path cheaply.
    x2 = jax.random.normal(jax.random.PRNGKey(1), (20, input_size),
                           jnp.float32)
    out2 = simple_ann_forward(x2, w1, b1, w2, b2, block_b=8)
    jax.block_until_ready(out2)
    ref2 = jnp.maximum(x2 @ w1 + b1, 0.0) @ w2 + b2
    assert out2.shape == (20, output_size)
    assert jnp.allclose(out2, ref2, atol=1e-5, rtol=1e-5), (
        f"max abs err {jnp.max(jnp.abs(out2 - ref2))}")

    print("KERNEL_OK")
</pallas_src>

<mosaic_0001>
module attributes {stable_mosaic.version = 11 : i64} {
  func.func @_mlp_kernel(%arg0: i32, %arg1: memref<2x16xf32, #tpu.memory_space<vmem>>, %arg2: memref<16x32xf32, #tpu.memory_space<vmem>>, %arg3: memref<1x32xf32, #tpu.memory_space<vmem>>, %arg4: memref<32x8xf32, #tpu.memory_space<vmem>>, %arg5: memref<1x8xf32, #tpu.memory_space<vmem>>, %arg6: memref<2x8xf32, #tpu.memory_space<vmem>>) attributes {dimension_semantics = [#tpu.dimension_semantics<parallel>], iteration_bounds = array<i64: 1>, scalar_prefetch = 0 : i64, scratch_operands = 0 : i64, tpu.core_type = #tpu.core_type<tc>, window_params = [{transform_indices = @transform_0, window_bounds = array<i64: 2, 16>}, {pipeline_mode = #tpu.pipeline_mode<synchronous>, transform_indices = @transform_1, window_bounds = array<i64: 16, 32>}, {pipeline_mode = #tpu.pipeline_mode<synchronous>, transform_indices = @transform_2, window_bounds = array<i64: 1, 32>}, {pipeline_mode = #tpu.pipeline_mode<synchronous>, transform_indices = @transform_3, window_bounds = array<i64: 32, 8>}, {pipeline_mode = #tpu.pipeline_mode<synchronous>, transform_indices = @transform_4, window_bounds = array<i64: 1, 8>}, {transform_indices = @transform_5, window_bounds = array<i64: 2, 8>}]} {
    %c0 = arith.constant 0 : index
    %c0_0 = arith.constant 0 : index
    %0 = vector.load %arg1[%c0, %c0_0] : memref<2x16xf32, #tpu.memory_space<vmem>>, vector<2x16xf32>
    %c0_1 = arith.constant 0 : index
    %c0_2 = arith.constant 0 : index
    %1 = vector.load %arg2[%c0_1, %c0_2] : memref<16x32xf32, #tpu.memory_space<vmem>>, vector<16x32xf32>
    %cst = arith.constant dense<0.000000e+00> : vector<2x32xf32>
    %2 = tpu.matmul %0, %1, %cst {dimension_numbers = #tpu.dot_dimension_numbers<[1], [0], [0], [1], [0, 0, 1, 1], [], []>} : vector<2x16xf32>, vector<16x32xf32>, vector<2x32xf32> -> vector<2x32xf32>
    %c0_3 = arith.constant 0 : index
    %c0_4 = arith.constant 0 : index
    %3 = vector.load %arg3[%c0_3, %c0_4] : memref<1x32xf32, #tpu.memory_space<vmem>>, vector<1x32xf32>
    %4 = vector.broadcast %3 : vector<1x32xf32> to vector<2x32xf32>
    %5 = arith.addf %2, %4 : vector<2x32xf32>
    %cst_5 = arith.constant 0.000000e+00 : f32
    %6 = vector.broadcast %cst_5 : f32 to vector<2x32xf32>
    %7 = arith.maximumf %5, %6 : vector<2x32xf32>
    %c0_6 = arith.constant 0 : index
    %c0_7 = arith.constant 0 : index
    %8 = vector.load %arg4[%c0_6, %c0_7] : memref<32x8xf32, #tpu.memory_space<vmem>>, vector<32x8xf32>
    %cst_8 = arith.constant dense<0.000000e+00> : vector<2x8xf32>
    %9 = tpu.matmul %7, %8, %cst_8 {dimension_numbers = #tpu.dot_dimension_numbers<[1], [0], [0], [1], [0, 0, 1, 1], [], []>} : vector<2x32xf32>, vector<32x8xf32>, vector<2x8xf32> -> vector<2x8xf32>
    %c0_9 = arith.constant 0 : index
    %c0_10 = arith.constant 0 : index
    %10 = vector.load %arg5[%c0_9, %c0_10] : memref<1x8xf32, #tpu.memory_space<vmem>>, vector<1x8xf32>
    %11 = vector.broadcast %10 : vector<1x8xf32> to vector<2x8xf32>
    %12 = arith.addf %9, %11 : vector<2x8xf32>
    %c0_11 = arith.constant 0 : index
    %c0_12 = arith.constant 0 : index
    %13 = vector.load %arg6[%c0_11, %c0_12] : memref<2x8xf32, #tpu.memory_space<vmem>>, vector<2x8xf32>
    tpu.vector_store %arg6[%c0_11, %c0_12], %12 {strides = array<i32>} : memref<2x8xf32, #tpu.memory_space<vmem>>, vector<2x8xf32>,
    return
  }
  func.func @transform_0(%arg0: i32) -> (i32, i32) {
    %c0_i32 = arith.constant 0 : i32
    %c0_i32_0 = arith.constant 0 : i32
    return %arg0, %c0_i32 : i32, i32
  }
  func.func @transform_1(%arg0: i32) -> (i32, i32) {
    %c0_i32 = arith.constant 0 : i32
    %c0_i32_0 = arith.constant 0 : i32
    %c0_i32_1 = arith.constant 0 : i32
    return %c0_i32, %c0_i32_0 : i32, i32
  }
  func.func @transform_2(%arg0: i32) -> (i32, i32) {
    %c0_i32 = arith.constant 0 : i32
    %c0_i32_0 = arith.constant 0 : i32
    %c0_i32_1 = arith.constant 0 : i32
    return %c0_i32, %c0_i32_0 : i32, i32
  }
  func.func @transform_3(%arg0: i32) -> (i32, i32) {
    %c0_i32 = arith.constant 0 : i32
    %c0_i32_0 = arith.constant 0 : i32
    %c0_i32_1 = arith.constant 0 : i32
    return %c0_i32, %c0_i32_0 : i32, i32
  }
  func.func @transform_4(%arg0: i32) -> (i32, i32) {
    %c0_i32 = arith.constant 0 : i32
    %c0_i32_0 = arith.constant 0 : i32
    %c0_i32_1 = arith.constant 0 : i32
    return %c0_i32, %c0_i32_0 : i32, i32
  }
  func.func @transform_5(%arg0: i32) -> (i32, i32) {
    %c0_i32 = arith.constant 0 : i32
    %c0_i32_0 = arith.constant 0 : i32
    return %arg0, %c0_i32 : i32, i32
  }
}

</mosaic_0001>

<bundles_post_ra>
// kernel: simple_ann_forward.1
= control target key start
LH: loop header
LB: loop body
LE: loop exit
PB: predicated region body
PF: predicated region fallthrough
CT: control target
= control target key end

     0   :  { %v274_v2 = vmov 0.0|0.0   ;;  %vm275_vm0 = vmmov 0   ;;  %v276_v4 = vmov 0.0   ;;  %s347_s0 = inlined_call_operand.vmem [shape: f32[2,16], index: 0, kind: input, shape index: {}]   ;;  %s348_s1 = inlined_call_operand.vmem [shape: f32[16,32], index: 1, kind: input, shape index: {}]   ;;  %s349_s2 = inlined_call_operand.vmem [shape: f32[1,32], index: 2, kind: input, shape index: {}]   ;;  %s350_s3 = inlined_call_operand.vmem [shape: f32[32,8], index: 3, kind: input, shape index: {}]   ;;  %s351_s4 = inlined_call_operand.vmem [shape: f32[1,8], index: 4, kind: input, shape index: {}]   ;;  %s352_s5 = inlined_call_operand.hbm [shape: f32[2,8], index: 5, kind: output, shape index: {}]  }
   0x1   :  { %v22_v0 = vld [vmem:[%s348_s1] sm:$0xff]  ;;  %v23_v1 = vld [vmem:[%s348_s1 + $0x8] sm:$0xff]  ;;  %237 = vmatprep.subr.bf16.mxu0 %v274_v2  ;;  %223 = vmatprep.mubr.msk.f32.mxu0 %vm275_vm0, %v276_v4 }
   0x2   :  { %v238_v3 = vpack.c.bf16 %v23_v1, %v22_v0  ;;  %v106_v5 = vld [vmem:[%s350_s3] sm:$0xff]  ;;  %v107_v6 = vld [vmem:[%s350_s3 + $0x8] sm:$0xff]  ;;  %240 = vmatprep.subr.bf16.mxu1 %v274_v2  ;;  %234 = vmatprep.mubr.msk.f32.mxu1 %vm275_vm0, %v276_v4 }
   0x3   :  { %v241_v7 = vpack.c.bf16 %v107_v6, %v106_v5 }
   0x4   :  { %10 = vsyncpa [#allocation3], 0  ;;  %239 = vmatpush3.bf16.msra.mxu0 %v238_v3  ;;  %v21_v8 = vld [vmem:[%s347_s0] sm:$0x3]  ;;  %vm31_vm1 = vcmask 130048   ;;  %v108_v9 = vld [vmem:[%s350_s3 + $0x10] sm:$0xff] }
   0x5   :  { %242 = vmatpush3.bf16.msra.mxu1 %v241_v7  ;;  %v109_v10 = vld [vmem:[%s350_s3 + $0x18] sm:$0xff]  ;;  %v207_v12 = vld [vmem:[%s349_s2] ss:$0 sm:$0xff]  ;;  %vm117_vm2 = vcmask 261120   ;;  %s277_s9 = smov [#allocation2]   ;;  %vm191_vm3 = vcmask 58368  }
   0x6   :  { %243 = vmatprep.subr.bf16.mxu1 %v274_v2  ;;  %v244_v11 = vpack.c.bf16 %v109_v10, %v108_v9  ;;  %v209_v17 = vld [vmem:[%s351_s4] ss:$0 sm:$0xff]  ;;  %s199_s10 = sshll.u32 %s277_s9, 4  ;;  %s200_s10 = int_to_ptr.vmem [resolvable:$true] %s199_s10 }
   0x7   :  { %224 = vmatmul.mubr.msk.f32.vlgmr.msra.gmra.mrb[0].mxu0 %vm31_vm1, %v21_v8  ;;  %s250_s3 = scalar_lea.vmem %s200_s10, 32  ;;  %p255_p1 = scmp.lt.s32.totalorder %s200_s10, %s200_s10 }
   0x8   :  { %p251_p0 = scmp.ne.s32.totalorder %s200_s10, %s250_s3  ;;  %p256_p2 = scmp.lt.s32.totalorder %s250_s3, %s250_s3 }
   0x9   :  { %245 = vmatpush3.bf16.msra.mxu1 %v244_v11 }
   0xa   :  { %p257_p3 = por %p256_p2, %p255_p1 }
   0xc   :  { %p258_p4 = pnand %p257_p3, %p251_p0 }
  0xda   :  { %v101_v13 = vpop.f32.mrb[0].mxu0 }
  0xdb   :  { %v102_v14 = vadd.f32 %v207_v12, %v101_v13  ;;  %v225_v15 = vpop.f32.mrb[1].mxu0 }
  0xdd   :  { %v105_v16 = vmax.f32 %v102_v14, 0.0 }
  0xdf   :  { %235 = vmatmul.mubr.msk.f32.vlgmr.msra.gmra.mrb[0].mxu1 %vm117_vm2, %v105_v16 }
 0x1b2   :  { %v187_v18 = vpop.f32.mrb[0].mxu1 }
 0x1b3   :  { %v188_v19 = vadd.f32 %v209_v17, %v187_v18  ;;  %v236_v20 = vpop.f32.mrb[1].mxu1 }
 0x1b5   :  { %192 = vst.msk [vmem:[#allocation2] sm:$0x3] %vm191_vm3, %v188_v19 }
 0x1b6   :  { %261 = shalt.err (!%p258_p4)
}
 0x1b7   :  { %s262_s12 = scalar_lea.hbm %s352_s5, 32 }
 0x1b8   :  { %p263_p5 = scmp.ne.s32.totalorder %s352_s5, %s262_s12  ;;  %p266_p6 = scmp.lt.u32.totalorder %s262_s12, %s352_s5 }
 0x1ba   :  { %p268_p7 = pnand %p266_p6, %p263_p5 }
 0x1bc   :  { %271 = shalt.err (!%p268_p7)
}
 0x1bd   :  { %202 = dma.vmem_to_hbm [thread:$0]  %s200_s10, 32, %s352_s5, [#allocation3]  }
 0x1be   :  { %272 = dma.done.wait [#allocation3], 32  }
 0x1bf   :  { %273 = vsyncadd [#allocation3], 4294967264 }
 0x1c0   :  { %206 = vsyncpa [#allocation3], 1 }

</bundles_post_ra>
